<compile_context>
chip_gen: v7x
topology: tpu7x:2x2x1
jax: 0.10.0
libtpu: 0.0.40
codegen_flags: <defaults>
</compile_context>

<pallas_src>
import jax
import jax.numpy as jnp
from jax.experimental import pallas as pl
from jax.experimental.pallas import tpu as pltpu

LANE = 128
SUBLANE = 8
_VMEM_BUDGET = 24 * 1024 * 1024  # v7x-safe working-set budget (chip has 64 MiB)


def _round_up(x, m):
    return ((x + m - 1) // m) * m


def _classifier_kernel(x_ref, w_ref, b_ref, o_ref):
    # One batch tile: y = x @ W + b, f32 MXU accumulation.
    # W is 128-lane padded; keep the wide tile only in VMEM/vregs and store the
    # narrow logits (masked vst is free here - the store slot has huge slack).
    acc = jnp.dot(x_ref[...], w_ref[...], preferred_element_type=jnp.float32)
    d_out = o_ref.shape[-1]
    o_ref[...] = (acc[:, :d_out] + b_ref[...]).astype(o_ref.dtype)


def init_params(key, hidden_dims, output_dim=10):
    """Matches nn.Linear(hidden_dims, output_dim) init ranges.

    PyTorch stores the weight as (out, in); we store the transpose (in, out)
    so the kernel does x @ W directly (identical math).
    """
    kw, kb = jax.random.split(key)
    bound = 1.0 / jnp.sqrt(float(hidden_dims))
    return {
        "w": jax.random.uniform(kw, (hidden_dims, output_dim), jnp.float32,
                                -bound, bound),
        "b": jax.random.uniform(kb, (1, output_dim), jnp.float32,
                                -bound, bound),
    }


def prep_params(params):
    """One-time (per-model) prep: 128-lane pad the weight, shape the bias.

    Hoisted out of the per-call path so the forward does no param reshuffling.
    """
    w = jnp.asarray(params["w"], jnp.float32)              # (H, D_out)
    b = jnp.asarray(params["b"], jnp.float32).reshape(1, -1)
    H, d_out = w.shape
    d_pad = max(LANE, _round_up(d_out, LANE))
    w_pad = jnp.zeros((H, d_pad), jnp.float32).at[:, :d_out].set(w)
    return {"w_pad": w_pad, "b": b}


def _pick_tile_b(B, H, d_out, tile_b):
    if tile_b is None:
        # Target ~2 MiB of x per grid step (amortizes ~0.35 us/step overhead)...
        bytes_per_row = H * 4
        target = max(SUBLANE, (2 * 1024 * 1024) // bytes_per_row)
        # ...capped so double-buffered x + out plus the resident padded W stay
        # inside a v7x-safe VMEM budget.
        per_row_vmem = 2 * (H * 4 + d_out * 4)
        cap = max(SUBLANE, (_VMEM_BUDGET - H * LANE * 4) // per_row_vmem)
        tile_b = min(target, cap, 8192)
    tile_b = _round_up(max(int(tile_b), SUBLANE), SUBLANE)
    # Tiny batches collapse to a single block.
    tile_b = min(tile_b, _round_up(B, SUBLANE))
    # Big batches: guarantee >=2 grid steps so the "parallel" axis actually
    # shards across both v7x TensorCores.
    if B >= 1024 and pl.cdiv(B, tile_b) < 2:
        tile_b = _round_up(pl.cdiv(B, 2), SUBLANE)
    return tile_b


def classifier_forward(x, prepped, *, tile_b=None):
    """logits = x @ W + b.

    x: (B, hidden_dims)            -- consumed in its original dtype.
    prepped["w_pad"]: (H, D_pad)   -- 128-lane padded f32 weight (from prep_params)
    prepped["b"]:     (1, D_out)   -- f32 bias
    Returns (B, D_out) float32 logits.
    """
    w_pad, b = prepped["w_pad"], prepped["b"]
    B, H = x.shape
    d_out = b.shape[1]
    d_pad = w_pad.shape[1]
    assert w_pad.shape[0] == H

    tile_b = _pick_tile_b(B, H, d_out, tile_b)
    grid = (pl.cdiv(B, tile_b),)

    # W / b are tiny and grid-invariant: keep one full copy resident in VMEM
    # (no per-step DMA, no double-buffering pressure).
    vmem_resident = pl.BlockSpec(memory_space=pltpu.MemorySpace.VMEM)

    cost = pl.CostEstimate(
        flops=2 * B * H * d_pad,
        transcendentals=0,
        bytes_accessed=(B * H * x.dtype.itemsize      # read x
                        + B * d_out * 4               # write logits
                        + H * d_pad * 4 + d_out * 4), # read W, b
    )

    return pl.pallas_call(
        _classifier_kernel,
        out_shape=jax.ShapeDtypeStruct((B, d_out), jnp.float32),
        grid_spec=pl.GridSpec(
            grid=grid,
            in_specs=[
                pl.BlockSpec((tile_b, H), lambda i: (i, 0)),   # x batch tile
                vmem_resident,                                 # W (H, D_pad)
                vmem_resident,                                 # b (1, D_out)
            ],
            out_specs=pl.BlockSpec((tile_b, d_out), lambda i: (i, 0)),
        ),
        compiler_params=pltpu.CompilerParams(
            dimension_semantics=("parallel",),
            vmem_limit_bytes=32 * 1024 * 1024,
        ),
        cost_estimate=cost,
    )(x, w_pad, b)


def reference_forward(x, params):
    # Plain f32 reference (same math as torch nn.Linear).
    return jnp.dot(x.astype(jnp.float32), params["w"],
                   preferred_element_type=jnp.float32) + params["b"]


if __name__ == "__main__":
    key = jax.random.PRNGKey(0)
    kx1, kx2, kx3, kp = jax.random.split(key, 4)

    hidden_dims, output_dim = 32, 10
    raw = init_params(kp, hidden_dims, output_dim)
    prepped = prep_params(raw)   # one-time weight pad/cast, not per forward

    # 1) tiny batch -> single block, grid of 1.
    x1 = jax.random.normal(kx1, (8, hidden_dims), dtype=jnp.float32)
    o1 = jax.block_until_ready(classifier_forward(x1, prepped))
    r1 = reference_forward(x1, raw)
    assert o1.shape == (8, output_dim), o1.shape
    assert jnp.allclose(o1, r1, atol=2e-3, rtol=2e-3), "single-block mismatch"

    # 2) multi-step "parallel" grid, exact split.
    x2 = jax.random.normal(kx2, (256, hidden_dims), dtype=jnp.float32)
    o2 = jax.block_until_ready(classifier_forward(x2, prepped, tile_b=64))
    r2 = reference_forward(x2, raw)
    assert o2.shape == (256, output_dim), o2.shape
    assert jnp.allclose(o2, r2, atol=2e-3, rtol=2e-3), "multi-block mismatch"

    # 3) ragged batch -> cdiv grid with a masked partial last block (no jnp.pad).
    x3 = jax.random.normal(kx3, (50, hidden_dims), dtype=jnp.float32)
    o3 = jax.block_until_ready(classifier_forward(x3, prepped, tile_b=16))
    r3 = reference_forward(x3, raw)
    assert o3.shape == (50, output_dim), o3.shape
    assert jnp.allclose(o3, r3, atol=2e-3, rtol=2e-3), "ragged-batch mismatch"

    print("KERNEL_OK")
</pallas_src>

<mosaic_0001>
module attributes {stable_mosaic.version = 11 : i64} {
  func.func @_classifier_kernel(%arg0: i32, %arg1: memref<8x32xf32, #tpu.memory_space<vmem>>, %arg2: memref<32x128xf32, #tpu.memory_space<vmem>>, %arg3: memref<1x10xf32, #tpu.memory_space<vmem>>, %arg4: memref<8x10xf32, #tpu.memory_space<vmem>>) attributes {dimension_semantics = [#tpu.dimension_semantics<parallel>], iteration_bounds = array<i64: 1>, scalar_prefetch = 0 : i64, scratch_operands = 0 : i64, tpu.core_type = #tpu.core_type<tc>, window_params = [{transform_indices = @transform_0, window_bounds = array<i64: 8, 32>}, {pipeline_mode = #tpu.pipeline_mode<synchronous>, transform_indices = @transform_1, window_bounds = array<i64: 32, 128>}, {pipeline_mode = #tpu.pipeline_mode<synchronous>, transform_indices = @transform_2, window_bounds = array<i64: 1, 10>}, {transform_indices = @transform_3, window_bounds = array<i64: 8, 10>}]} {
    %c0 = arith.constant 0 : index
    %c0_0 = arith.constant 0 : index
    %0 = vector.load %arg1[%c0, %c0_0] : memref<8x32xf32, #tpu.memory_space<vmem>>, vector<8x32xf32>
    %c0_1 = arith.constant 0 : index
    %c0_2 = arith.constant 0 : index
    %1 = vector.load %arg2[%c0_1, %c0_2] : memref<32x128xf32, #tpu.memory_space<vmem>>, vector<32x128xf32>
    %cst = arith.constant dense<0.000000e+00> : vector<8x128xf32>
    %2 = tpu.matmul %0, %1, %cst {dimension_numbers = #tpu.dot_dimension_numbers<[1], [0], [0], [1], [0, 0, 1, 1], [], []>} : vector<8x32xf32>, vector<32x128xf32>, vector<8x128xf32> -> vector<8x128xf32>
    %3 = vector.extract_strided_slice %2 {offsets = [0, 0], sizes = [8, 10], strides = [1, 1]} : vector<8x128xf32> to vector<8x10xf32>
    %c0_3 = arith.constant 0 : index
    %c0_4 = arith.constant 0 : index
    %4 = vector.load %arg3[%c0_3, %c0_4] : memref<1x10xf32, #tpu.memory_space<vmem>>, vector<1x10xf32>
    %5 = vector.broadcast %4 : vector<1x10xf32> to vector<8x10xf32>
    %6 = arith.addf %3, %5 : vector<8x10xf32>
    %c0_5 = arith.constant 0 : index
    %c0_6 = arith.constant 0 : index
    %7 = vector.load %arg4[%c0_5, %c0_6] : memref<8x10xf32, #tpu.memory_space<vmem>>, vector<8x10xf32>
    tpu.vector_store %arg4[%c0_5, %c0_6], %6 {strides = array<i32>} : memref<8x10xf32, #tpu.memory_space<vmem>>, vector<8x10xf32>,
    return
  }
  func.func @transform_0(%arg0: i32) -> (i32, i32) {
    %c0_i32 = arith.constant 0 : i32
    %c0_i32_0 = arith.constant 0 : i32
    return %arg0, %c0_i32 : i32, i32
  }
  func.func @transform_1(%arg0: i32) -> (i32, i32) {
    %c0_i32 = arith.constant 0 : i32
    %c0_i32_0 = arith.constant 0 : i32
    %c0_i32_1 = arith.constant 0 : i32
    return %c0_i32, %c0_i32_0 : i32, i32
  }
  func.func @transform_2(%arg0: i32) -> (i32, i32) {
    %c0_i32 = arith.constant 0 : i32
    %c0_i32_0 = arith.constant 0 : i32
    %c0_i32_1 = arith.constant 0 : i32
    return %c0_i32, %c0_i32_0 : i32, i32
  }
  func.func @transform_3(%arg0: i32) -> (i32, i32) {
    %c0_i32 = arith.constant 0 : i32
    %c0_i32_0 = arith.constant 0 : i32
    return %arg0, %c0_i32 : i32, i32
  }
}

</mosaic_0001>

<bundles_post_ra>
// kernel: tpu_custom_call.1
= control target key start
LH: loop header
LB: loop body
LE: loop exit
PB: predicated region body
PF: predicated region fallthrough
CT: control target
= control target key end

     0   :  { %8 = vsyncpa [#allocation3], 0  ;;  %s324_s0 = inlined_call_operand.hbm [shape: f32[8,32], index: 0, kind: input, shape index: {}]   ;;  %s325_s1 = inlined_call_operand.hbm [shape: f32[32,128], index: 1, kind: input, shape index: {}]   ;;  %s326_s2 = inlined_call_operand.vmem [shape: f32[1,10], index: 2, kind: input, shape index: {}]   ;;  %s327_s3 = inlined_call_operand.hbm [shape: f32[8,10], index: 3, kind: output, shape index: {}]  }
   0x1   :  { %9 = vsyncpa [#allocation6], 0 }
   0x2   :  { %10 = vsyncpa [#allocation4], 0  ;;  %s250_s12 = smov [#allocation2]   ;;  %s251_s14 = smov [#allocation5]  }
   0x3   :  { %s17_s13 = sshll.u32 %s250_s12, 4  ;;  %s26_s15 = sshll.u32 %s251_s14, 4  ;;  %s18_s13 = int_to_ptr.vmem [resolvable:$true] %s17_s13  ;;  %s278_s15 = int_to_ptr.vmem [resolvable:$true] %s26_s15 }
   0x4   :  { %s178_s18 = scalar_lea.hbm %s324_s0, 128 }
   0x5   :  { %p179_p0 = scmp.ne.s32.totalorder %s324_s0, %s178_s18  ;;  %p182_p1 = scmp.lt.u32.totalorder %s178_s18, %s324_s0 }
   0x7   :  { %p184_p2 = pnand %p182_p1, %p179_p0 }
   0x9   :  { %187 = shalt.err (!%p184_p2)
}
   0xa   :  { %s188_s23 = scalar_lea.vmem %s18_s13, 128  ;;  %p193_p4 = scmp.lt.s32.totalorder %s18_s13, %s18_s13 }
   0xb   :  { %p189_p3 = scmp.ne.s32.totalorder %s18_s13, %s188_s23  ;;  %p194_p5 = scmp.lt.s32.totalorder %s188_s23, %s188_s23 }
   0xd   :  { %p195_p6 = por %p194_p5, %p193_p4 }
   0xf   :  { %p196_p7 = pnand %p195_p6, %p189_p3 }
  0x11   :  { %199 = shalt.err (!%p196_p7)
}
  0x12   :  { %20 = dma.hbm_to_vmem [thread:$0]  %s324_s0, 128, %s18_s13, [#allocation3]  }
  0x13   :  { %s200_s28 = scalar_lea.hbm %s325_s1, 512 }
  0x14   :  { %p201_p8 = scmp.ne.s32.totalorder %s325_s1, %s200_s28  ;;  %p204_p9 = scmp.lt.u32.totalorder %s200_s28, %s325_s1 }
  0x16   :  { %p206_p10 = pnand %p204_p9, %p201_p8 }
  0x18   :  { %209 = shalt.err (!%p206_p10)
}
  0x19   :  { %s210_s6 = scalar_lea.vmem %s278_s15, 512  ;;  %p215_p12 = scmp.lt.s32.totalorder %s278_s15, %s278_s15 }
  0x1a   :  { %p211_p11 = scmp.ne.s32.totalorder %s278_s15, %s210_s6  ;;  %p216_p13 = scmp.lt.s32.totalorder %s210_s6, %s210_s6 }
  0x1c   :  { %p217_p0 = por %p216_p13, %p215_p12 }
  0x1e   :  { %p218_p1 = pnand %p217_p0, %p211_p11 }
  0x20   :  { %221 = shalt.err (!%p218_p1)
}
  0x21   :  { %s252_s0 = smov 128   ;;  %s253_s7 = smov 8  }
  0x22   :  { %32 = dma.hbm_to_vmem [thread:$0]  %s325_s1, 512, %s278_s15, [#allocation6], %s252_s0, %s252_s0, %s253_s7  }
  0x23   :  { %244 = dma.done.wait [#allocation3], 128  }
  0x24   :  { %245 = vsyncadd [#allocation3], 4294967168 }
  0x25   :  { %246 = dma.done.wait [#allocation6], 512  }
  0x26   :  { %247 = vsyncadd [#allocation6], 4294966784  ;;  %v254_v0 = vmov 0.0|0.0   ;;  %vm255_vm0 = vmmov 0   ;;  %v256_v1 = vmov 0.0   ;;  %v42_v2 = vld [vmem:[#allocation5] sm:$0xff] }
  0x27   :  { %164 = vmatprep.subr.bf16.mxu0 %v254_v0  ;;  %161 = vmatprep.mubr.msk.f32.mxu0 %vm255_vm0, %v256_v1  ;;  %v43_v3 = vld [vmem:[#allocation5 + $0x8] sm:$0xff]  ;;  %v44_v4 = vld [vmem:[#allocation5 + $0x10] sm:$0xff]  ;;  %v45_v6 = vld [vmem:[#allocation5 + $0x18] sm:$0xff]  ;;  %vm46_vm1 = vcmask 261120   ;;  %s257_s11 = smov [#allocation7]   ;;  %vm128_vm2 = vcmask 80896  }
  0x28   :  { %v165_v5 = vpack.c.bf16 %v43_v3, %v42_v2  ;;  %v168_v7 = vpack.c.bf16 %v45_v6, %v44_v4  ;;  %v41_v8 = vld [vmem:[#allocation2] sm:$0xff]  ;;  %s136_s12 = sshll.u32 %s257_s11, 4  ;;  %s137_s12 = int_to_ptr.vmem [resolvable:$true] %s136_s12 }
  0x29   :  { %v147_v9 = vld [vmem:[%s326_s2] ss:$0 sm:$0xff]  ;;  %s222_s13 = scalar_lea.vmem %s137_s12, 128  ;;  %p227_p3 = scmp.lt.s32.totalorder %s137_s12, %s137_s12 }
  0x2a   :  { %166 = vmatpush3.bf16.msra.mxu0 %v165_v5  ;;  %p223_p2 = scmp.ne.s32.totalorder %s137_s12, %s222_s13  ;;  %p228_p4 = scmp.lt.s32.totalorder %s222_s13, %s222_s13 }
  0x2b   :  { %167 = vmatprep.subr.bf16.mxu0 %v254_v0 }
  0x2c   :  { %p229_p5 = por %p228_p4, %p227_p3 }
  0x2e   :  { %169 = vmatpush3.bf16.msra.mxu0 %v168_v7  ;;  %p230_p6 = pnand %p229_p5, %p223_p2 }
  0x31   :  { %162 = vmatmul.mubr.msk.f32.vlgmr.msra.gmra.mrb[0].mxu0 %vm46_vm1, %v41_v8 }
 0x104   :  { %v116_v10 = vpop.f32.mrb[0].mxu0 }
 0x105   :  { %v127_v11 = vadd.f32 %v147_v9, %v116_v10  ;;  %v163_v12 = vpop.f32.mrb[1].mxu0 }
 0x107   :  { %129 = vst.msk [vmem:[#allocation7] sm:$0xff] %vm128_vm2, %v127_v11 }
 0x108   :  { %233 = shalt.err (!%p230_p6)
}
 0x109   :  { %s234_s16 = scalar_lea.hbm %s327_s3, 128 }
 0x10a   :  { %p235_p7 = scmp.ne.s32.totalorder %s327_s3, %s234_s16  ;;  %p238_p8 = scmp.lt.u32.totalorder %s234_s16, %s327_s3 }
 0x10c   :  { %p240_p9 = pnand %p238_p8, %p235_p7 }
 0x10e   :  { %243 = shalt.err (!%p240_p9)
}
 0x10f   :  { %139 = dma.vmem_to_hbm [thread:$0]  %s137_s12, 128, %s327_s3, [#allocation4]  }
 0x110   :  { %248 = dma.done.wait [#allocation4], 128  }
 0x111   :  { %249 = vsyncadd [#allocation4], 4294967168 }
 0x112   :  { %143 = vsyncpa [#allocation3], 1 }
 0x113   :  { %144 = vsyncpa [#allocation6], 1 }
 0x114   :  { %145 = vsyncpa [#allocation4], 1 }

</bundles_post_ra>
